<compile_context>
chip_gen: v7x
topology: tpu7x:2x2x1
jax: 0.10.0
libtpu: 0.0.40
codegen_flags: <defaults>
</compile_context>

<pallas_src>
import jax
import jax.numpy as jnp
from jax.experimental import pallas as pl
from jax.experimental.pallas import tpu as pltpu

LANE = 128
ROW_ALIGN = 16          # bf16 sublane tile (activations are cast to bf16 in-kernel)
CLAMP = 50.0


def _round_up(x, m):
    return ((x + m - 1) // m) * m


def _discriminator_kernel(x_ref, w1_ref, w2_ref, vecs_ref, o_ref):
    """One batch-tile of the fused 3-layer MLP.

    x_ref   : (TM, n_input)        f32   (cast to bf16 here)
    w1_ref  : (n_input, n_hidden)  bf16  (W_1 transposed)
    w2_ref  : (n_hidden, n_hidden) bf16  (W_2 transposed)
    vecs_ref: (4, n_hidden)        f32   row0=b_1, row1=b_2, row2=W_3 row,
                                         row3=[b_3, 0, ...]
    o_ref   : (TM, 1)              f32   clamped score
    """
    b1 = vecs_ref[0:1, :]
    b2 = vecs_ref[1:2, :]
    w3 = vecs_ref[2:3, :]
    b3 = vecs_ref[3:4, 0:1]

    # Layer 1: Linear + ReLU  (bf16 MXU, f32 accumulate, f32 elementwise)
    x = x_ref[...].astype(jnp.bfloat16)
    h = jnp.dot(x, w1_ref[...], preferred_element_type=jnp.float32) + b1
    h = jnp.maximum(h, 0.0)

    # Layer 2: Linear + ReLU
    h = jnp.dot(h.astype(jnp.bfloat16), w2_ref[...],
                preferred_element_type=jnp.float32) + b2
    h = jnp.maximum(h, 0.0)

    # Layer 3: single output column -> VPU multiply + lane reduce (f32),
    # avoiding a 128-wide zero-padded MXU matmul and a padded writeback.
    s = jnp.sum(h * w3, axis=-1, keepdims=True) + b3
    o_ref[...] = jnp.clip(s, -CLAMP, CLAMP)


def prepare_discriminator_params(params):
    """One-time prep of PyTorch-layout params [W_1,b_1,W_2,b_2,W_3,b_3]."""
    W1, b1, W2, b2, W3, b3 = params
    n_hidden, _ = W1.shape
    assert n_hidden % LANE == 0, "hidden width must be lane-aligned (512 is)"
    w1t = W1.T.astype(jnp.bfloat16)                       # (n_input, n_hidden)
    w2t = W2.T.astype(jnp.bfloat16)                       # (n_hidden, n_hidden)
    vecs = jnp.zeros((4, n_hidden), jnp.float32)
    vecs = vecs.at[0].set(b1).at[1].set(b2).at[2].set(W3[0]).at[3, 0].set(b3[0])
    return w1t, w2t, vecs


def _choose_tm(B, batch_tile):
    """Batch-tile heuristic: fill the 256-wide MXU M dim, but give the
    'parallel' grid >=2 steps (v7x megacore) whenever each tile stays >=256."""
    if B >= 2 * batch_tile:
        return batch_tile
    half = _round_up(-(-B // 2), ROW_ALIGN)
    if half >= 256:
        return half
    return min(_round_up(B, ROW_ALIGN), batch_tile)


def discriminator_forward(x, prepared, *, batch_tile=512):
    """x: (B, n_input) f32.  prepared: output of prepare_discriminator_params."""
    w1t, w2t, vecs = prepared
    n_input, n_hidden = w1t.shape
    B = x.shape[0]
    assert x.shape[1] == n_input

    tm = _choose_tm(B, batch_tile)
    b_pad = _round_up(B, tm)
    if b_pad != B:                      # only pad the batch when tm doesn't divide B
        x = jnp.pad(x, ((0, b_pad - B), (0, 0)))

    grid = (b_pad // tm,)

    def _resident(shape):
        # Constant block index -> stays VMEM-resident across all grid steps.
        return pl.BlockSpec(shape, lambda i: (0, 0))

    flops = 2 * b_pad * n_hidden * (n_input + n_hidden + 1)
    bytes_accessed = (4 * b_pad * n_input          # x (f32)
                      + 2 * (w1t.size + w2t.size)  # bf16 weights
                      + 4 * vecs.size              # packed biases / W_3 row
                      + 4 * b_pad)                 # score output

    out = pl.pallas_call(
        _discriminator_kernel,
        out_shape=jax.ShapeDtypeStruct((b_pad, 1), jnp.float32),
        grid=grid,
        in_specs=[
            pl.BlockSpec((tm, n_input), lambda i: (i, 0)),   # x: tiled over batch
            _resident((n_input, n_hidden)),                  # W1.T
            _resident((n_hidden, n_hidden)),                 # W2.T
            _resident((4, n_hidden)),                        # packed b1/b2/W3/b3
        ],
        out_specs=pl.BlockSpec((tm, 1), lambda i: (i, 0)),
        compiler_params=pltpu.CompilerParams(
            dimension_semantics=("parallel",),
            vmem_limit_bytes=32 * 1024 * 1024,
        ),
        cost_estimate=pl.CostEstimate(
            flops=flops, transcendentals=0, bytes_accessed=bytes_accessed),
    )(x, w1t, w2t, vecs)

    return out if b_pad == B else out[:B]


def init_discriminator_params(key, n_input, n_hidden=512):
    """Matches the PyTorch module: all params ~ N(0, 0.1^2), PyTorch layout."""
    ks = jax.random.split(key, 6)
    W1 = 0.1 * jax.random.normal(ks[0], (n_hidden, n_input), jnp.float32)
    b1 = 0.1 * jax.random.normal(ks[1], (n_hidden,), jnp.float32)
    W2 = 0.1 * jax.random.normal(ks[2], (n_hidden, n_hidden), jnp.float32)
    b2 = 0.1 * jax.random.normal(ks[3], (n_hidden,), jnp.float32)
    W3 = 0.1 * jax.random.normal(ks[4], (1, n_hidden), jnp.float32)
    b3 = 0.1 * jax.random.normal(ks[5], (1,), jnp.float32)
    return [W1, b1, W2, b2, W3, b3]


def _reference_forward(x, params):
    """Pure-JAX reference mirroring the kernel's numerics
    (bf16 matmuls with f32 accumulation for layers 1-2, f32 layer 3)."""
    W1, b1, W2, b2, W3, b3 = params
    h = jnp.dot(x.astype(jnp.bfloat16), W1.T.astype(jnp.bfloat16),
                preferred_element_type=jnp.float32) + b1
    h = jnp.maximum(h, 0.0)
    h = jnp.dot(h.astype(jnp.bfloat16), W2.T.astype(jnp.bfloat16),
                preferred_element_type=jnp.float32) + b2
    h = jnp.maximum(h, 0.0)
    s = jnp.sum(h * W3[0], axis=-1, keepdims=True) + b3
    return jnp.clip(s, -CLAMP, CLAMP)


if __name__ == "__main__":
    key = jax.random.PRNGKey(0)
    k_param, k_x = jax.random.split(key)

    batch = 64
    n_input = 32

    params = init_discriminator_params(k_param, n_input)
    prepared = prepare_discriminator_params(params)   # one-time weight prep
    x = jax.random.normal(k_x, (batch, n_input), jnp.float32)

    out = discriminator_forward(x, prepared)
    out = jax.block_until_ready(out)
    assert out.shape == (batch, 1)

    ref = _reference_forward(x, params)
    assert jnp.allclose(out, ref, atol=5e-3, rtol=5e-3), \
        f"max abs diff = {float(jnp.max(jnp.abs(out - ref)))}"

    print("KERNEL_OK")
</pallas_src>

<mosaic_0001>
module attributes {stable_mosaic.version = 11 : i64} {
  func.func @_discriminator_kernel(%arg0: i32, %arg1: memref<64x32xf32, #tpu.memory_space<vmem>>, %arg2: memref<32x512xbf16, #tpu.memory_space<vmem>>, %arg3: memref<512x512xbf16, #tpu.memory_space<vmem>>, %arg4: memref<4x512xf32, #tpu.memory_space<vmem>>, %arg5: memref<64x1xf32, #tpu.memory_space<vmem>>) attributes {dimension_semantics = [#tpu.dimension_semantics<parallel>], iteration_bounds = array<i64: 1>, scalar_prefetch = 0 : i64, scratch_operands = 0 : i64, tpu.core_type = #tpu.core_type<tc>, window_params = [{transform_indices = @transform_0, window_bounds = array<i64: 64, 32>}, {pipeline_mode = #tpu.pipeline_mode<synchronous>, transform_indices = @transform_1, window_bounds = array<i64: 32, 512>}, {pipeline_mode = #tpu.pipeline_mode<synchronous>, transform_indices = @transform_2, window_bounds = array<i64: 512, 512>}, {pipeline_mode = #tpu.pipeline_mode<synchronous>, transform_indices = @transform_3, window_bounds = array<i64: 4, 512>}, {transform_indices = @transform_4, window_bounds = array<i64: 64, 1>}]} {
    %c0 = arith.constant 0 : index
    %c0_0 = arith.constant 0 : index
    %0 = vector.load %arg4[%c0, %c0_0] : memref<4x512xf32, #tpu.memory_space<vmem>>, vector<1x512xf32>
    %c1 = arith.constant 1 : index
    %c0_1 = arith.constant 0 : index
    %1 = vector.load %arg4[%c1, %c0_1] : memref<4x512xf32, #tpu.memory_space<vmem>>, vector<1x512xf32>
    %c2 = arith.constant 2 : index
    %c0_2 = arith.constant 0 : index
    %2 = vector.load %arg4[%c2, %c0_2] : memref<4x512xf32, #tpu.memory_space<vmem>>, vector<1x512xf32>
    %c3 = arith.constant 3 : index
    %c0_3 = arith.constant 0 : index
    %3 = vector.load %arg4[%c3, %c0_3] : memref<4x512xf32, #tpu.memory_space<vmem>>, vector<1x1xf32>
    %c0_4 = arith.constant 0 : index
    %c0_5 = arith.constant 0 : index
    %4 = vector.load %arg1[%c0_4, %c0_5] : memref<64x32xf32, #tpu.memory_space<vmem>>, vector<64x32xf32>
    %5 = arith.truncf %4 : vector<64x32xf32> to vector<64x32xbf16>
    %c0_6 = arith.constant 0 : index
    %c0_7 = arith.constant 0 : index
    %6 = vector.load %arg2[%c0_6, %c0_7] : memref<32x512xbf16, #tpu.memory_space<vmem>>, vector<32x512xbf16>
    %cst = arith.constant dense<0.000000e+00> : vector<64x512xf32>
    %7 = tpu.matmul %5, %6, %cst {dimension_numbers = #tpu.dot_dimension_numbers<[1], [0], [0], [1], [0, 0, 1, 1], [], []>} : vector<64x32xbf16>, vector<32x512xbf16>, vector<64x512xf32> -> vector<64x512xf32>
    %8 = vector.broadcast %0 : vector<1x512xf32> to vector<64x512xf32>
    %9 = arith.addf %7, %8 : vector<64x512xf32>
    %cst_8 = arith.constant 0.000000e+00 : f32
    %10 = vector.broadcast %cst_8 : f32 to vector<64x512xf32>
    %11 = arith.maximumf %9, %10 : vector<64x512xf32>
    %12 = arith.truncf %11 : vector<64x512xf32> to vector<64x512xbf16>
    %c0_9 = arith.constant 0 : index
    %c0_10 = arith.constant 0 : index
    %13 = vector.load %arg3[%c0_9, %c0_10] : memref<512x512xbf16, #tpu.memory_space<vmem>>, vector<512x512xbf16>
    %cst_11 = arith.constant dense<0.000000e+00> : vector<64x512xf32>
    %14 = tpu.matmul %12, %13, %cst_11 {dimension_numbers = #tpu.dot_dimension_numbers<[1], [0], [0], [1], [0, 0, 1, 1], [], []>} : vector<64x512xbf16>, vector<512x512xbf16>, vector<64x512xf32> -> vector<64x512xf32>
    %15 = vector.broadcast %1 : vector<1x512xf32> to vector<64x512xf32>
    %16 = arith.addf %14, %15 : vector<64x512xf32>
    %cst_12 = arith.constant 0.000000e+00 : f32
    %17 = vector.broadcast %cst_12 : f32 to vector<64x512xf32>
    %18 = arith.maximumf %16, %17 : vector<64x512xf32>
    %19 = vector.broadcast %2 : vector<1x512xf32> to vector<64x512xf32>
    %20 = arith.mulf %18, %19 : vector<64x512xf32>
    %cst_13 = arith.constant dense<0.000000e+00> : vector<64xf32>
    %21 = vector.multi_reduction <add>, %20, %cst_13 [1] : vector<64x512xf32> to vector<64xf32>
    %22 = vector.shape_cast %21 : vector<64xf32> to vector<64x1xf32>
    %23 = vector.broadcast %3 : vector<1x1xf32> to vector<64x1xf32>
    %24 = arith.addf %22, %23 : vector<64x1xf32>
    %cst_14 = arith.constant -5.000000e+01 : f32
    %cst_15 = arith.constant 5.000000e+01 : f32
    %25 = vector.broadcast %cst_14 : f32 to vector<64x1xf32>
    %26 = arith.maximumf %25, %24 : vector<64x1xf32>
    %27 = vector.broadcast %cst_15 : f32 to vector<64x1xf32>
    %28 = arith.minimumf %27, %26 : vector<64x1xf32>
    %c0_16 = arith.constant 0 : index
    %c0_17 = arith.constant 0 : index
    %29 = vector.load %arg5[%c0_16, %c0_17] : memref<64x1xf32, #tpu.memory_space<vmem>>, vector<64x1xf32>
    tpu.vector_store %arg5[%c0_16, %c0_17], %28 {strides = array<i32>} : memref<64x1xf32, #tpu.memory_space<vmem>>, vector<64x1xf32>,
    return
  }
  func.func @transform_0(%arg0: i32) -> (i32, i32) {
    %c0_i32 = arith.constant 0 : i32
    %c0_i32_0 = arith.constant 0 : i32
    return %arg0, %c0_i32 : i32, i32
  }
  func.func @transform_1(%arg0: i32) -> (i32, i32) {
    %c0_i32 = arith.constant 0 : i32
    %c0_i32_0 = arith.constant 0 : i32
    %c0_i32_1 = arith.constant 0 : i32
    return %c0_i32, %c0_i32_0 : i32, i32
  }
  func.func @transform_2(%arg0: i32) -> (i32, i32) {
    %c0_i32 = arith.constant 0 : i32
    %c0_i32_0 = arith.constant 0 : i32
    %c0_i32_1 = arith.constant 0 : i32
    return %c0_i32, %c0_i32_0 : i32, i32
  }
  func.func @transform_3(%arg0: i32) -> (i32, i32) {
    %c0_i32 = arith.constant 0 : i32
    %c0_i32_0 = arith.constant 0 : i32
    %c0_i32_1 = arith.constant 0 : i32
    return %c0_i32, %c0_i32_0 : i32, i32
  }
  func.func @transform_4(%arg0: i32) -> (i32, i32) {
    %c0_i32 = arith.constant 0 : i32
    %c0_i32_0 = arith.constant 0 : i32
    return %arg0, %c0_i32 : i32, i32
  }
}

</mosaic_0001>

<bundles_post_ra>
// kernel: tpu_custom_call.1
= control target key start
LH: loop header
LB: loop body
LE: loop exit
PB: predicated region body
PF: predicated region fallthrough
CT: control target
= control target key end

     0   :  { %9 = vsyncpa [#allocation3], 0  ;;  %s2025_s15 = smov [#allocation2]   ;;  %s2346_s0 = inlined_call_operand.vmem [shape: f32[64,32], index: 0, kind: input, shape index: {}]   ;;  %s2347_s1 = inlined_call_operand.vmem [shape: bf16[32,512], index: 1, kind: input, shape index: {}]   ;;  %s2348_s2 = inlined_call_operand.hbm [shape: bf16[512,512], index: 2, kind: input, shape index: {}]   ;;  %s2349_s3 = inlined_call_operand.vmem [shape: f32[4,512], index: 3, kind: input, shape index: {}]   ;;  %s2350_s4 = inlined_call_operand.vmem [shape: f32[64,1], index: 4, kind: output, shape index: {}]  }
   0x1   :  { %s19_s16 = sshll.u32 %s2025_s15, 4  ;;  %s2001_s19 = scalar_lea.hbm %s2348_s2, 16384  ;;  %s20_s16 = int_to_ptr.vmem [resolvable:$true] %s19_s16 }
   0x2   :  { %p2002_p0 = scmp.ne.s32.totalorder %s2348_s2, %s2001_s19  ;;  %p2005_p1 = scmp.lt.u32.totalorder %s2001_s19, %s2348_s2 }
   0x4   :  { %p2007_p2 = pnand %p2005_p1, %p2002_p0 }
   0x6   :  { %2010 = shalt.err (!%p2007_p2)
}
   0x7   :  { %s2011_s24 = scalar_lea.vmem %s20_s16, 16384  ;;  %p2016_p4 = scmp.lt.s32.totalorder %s20_s16, %s20_s16 }
   0x8   :  { %p2012_p3 = scmp.ne.s32.totalorder %s20_s16, %s2011_s24  ;;  %p2017_p5 = scmp.lt.s32.totalorder %s2011_s24, %s2011_s24 }
   0xa   :  { %p2018_p6 = por %p2017_p5, %p2016_p4 }
   0xc   :  { %p2019_p7 = pnand %p2018_p6, %p2012_p3 }
   0xe   :  { %2022 = shalt.err (!%p2019_p7)
}
   0xf   :  { %s2026_s25 = smov 256   ;;  %s2027_s26 = smov 16  }
  0x10   :  { %25 = dma.hbm_to_vmem [thread:$0]  %s2348_s2, 16384, %s20_s16, [#allocation3], %s2026_s25, %s2026_s25, %s2027_s26  }
  0x11   :  { %2023 = dma.done.wait [#allocation3], 16384  }
  0x12   :  { %2024 = vsyncadd [#allocation3], 4294950912  ;;  %v2028_v0 = vmov 0   ;;  %v1797_v1 = vld [vmem:[%s2347_s1 + $0x4] ss:$16 sps:$4 sm:$0xff]   ;;  %v39_v6 = vld [vmem:[%s2346_s0 + $0x8] sm:$0xff] }
  0x13   :  { %164 = vmatprep.mubr.bf16.mxu0 %v2028_v0  ;;  %237 = vmatprep.mubr.bf16.mxu1 %v2028_v0  ;;  %v1799_v2 = vld [vmem:[%s2347_s1] ss:$16 sps:$4 sm:$0xff]   ;;  %v1800_v3 = vld [vmem:[%s2347_s1 + $0x24] ss:$16 sps:$4 sm:$0xff]   ;;  %v1803_v8 = vld [vmem:[%s2347_s1 + $0xc] ss:$16 sps:$4 sm:$0xff]  }
  0x14   :  { %132 = vmatprep.subr.bf16.mxu0 %v1797_v1  ;;  %v1802_v4 = vld [vmem:[%s2347_s1 + $0x20] ss:$16 sps:$4 sm:$0xff]   ;;  %v1805_v9 = vld [vmem:[%s2347_s1 + $0x8] ss:$16 sps:$4 sm:$0xff]   ;;  %vm119_vm0 = vcmask 261120   ;;  %205 = vmatprep.subr.bf16.mxu1 %v1803_v8  ;;  %vm1560_vm1 = vcmask 7168  }
  0x15   :  { %133 = vmatpush1.bf16.msra.mxu0 %v1799_v2  ;;  %v38_v5 = vld [vmem:[%s2346_s0] sm:$0xff]  ;;  %v1806_v10 = vld [vmem:[%s2347_s1 + $0x2c] ss:$16 sps:$4 sm:$0xff]   ;;  %v1808_v11 = vld [vmem:[%s2347_s1 + $0x28] ss:$16 sps:$4 sm:$0xff]   ;;  %206 = vmatpush1.bf16.msra.mxu1 %v1805_v9 }
  0x16   :  { %134 = vmatprep.subr.bf16.mxu0 %v1800_v3  ;;  %v46_v7 = vpack.c.bf16 %v39_v6, %v38_v5  ;;  %v1809_v12 = vld [vmem:[#allocation2] ss:$16 sps:$4 sm:$0xff]   ;;  %v1811_v13 = vld [vmem:[#allocation2 + $0x4] ss:$16 sps:$4 sm:$0xff]   ;;  %207 = vmatprep.subr.bf16.mxu1 %v1806_v10  ;;  %v1814_v15 = vld [vmem:[#allocation2 + $0xc] ss:$16 sps:$4 sm:$0xff]  }
  0x17   :  { %v40_v14 = vld [vmem:[%s2346_s0 + $0x10] sm:$0xff]  ;;  %v41_v16 = vld [vmem:[%s2346_s0 + $0x18] sm:$0xff]  ;;  %v42_v27 = vld [vmem:[%s2346_s0 + $0x20] sm:$0xff] }
  0x18   :  { %v1817_v17 = vld [vmem:[#allocation2 + $0x24] ss:$16 sps:$4 sm:$0xff]   ;;  %v1815_v18 = vld [vmem:[#allocation2 + $0x20] ss:$16 sps:$4 sm:$0xff]   ;;  %v1812_v19 = vld [vmem:[#allocation2 + $0x8] ss:$16 sps:$4 sm:$0xff]   ;;  %v47_v20 = vpack.c.bf16 %v41_v16, %v40_v14 }
  0x19   :  { %135 = vmatpush1.bf16.msra.mxu0 %v1802_v4  ;;  %208 = vmatpush1.bf16.msra.mxu1 %v1808_v11  ;;  %v1820_v21 = vld [vmem:[#allocation2 + $0x2c] ss:$16 sps:$4 sm:$0xff]   ;;  %v1818_v22 = vld [vmem:[#allocation2 + $0x28] ss:$16 sps:$4 sm:$0xff]   ;;  %v1823_v23 = vld [vmem:[#allocation2 + $0x44] ss:$16 sps:$4 sm:$0xff]  }
  0x1a   :  { %1115 = vmatprep.subr.bf16.mxu0 %v1811_v13  ;;  %1261 = vmatprep.subr.bf16.mxu1 %v1814_v15  ;;  %v1821_v24 = vld [vmem:[#allocation2 + $0x40] ss:$16 sps:$4 sm:$0xff]   ;;  %v1829_v25 = vld [vmem:[#allocation2 + $0x64] ss:$16 sps:$4 sm:$0xff]   ;;  %v1826_v26 = vld [vmem:[#allocation2 + $0x4c] ss:$16 sps:$4 sm:$0xff]  }
  0x1b   :  { %v43_v28 = vld [vmem:[%s2346_s0 + $0x28] sm:$0xff]  ;;  %v1827_v29 = vld [vmem:[#allocation2 + $0x60] ss:$16 sps:$4 sm:$0xff]   ;;  %v1835_v34 = vld [vmem:[#allocation2 + $0x84] ss:$16 sps:$4 sm:$0xff]  }
  0x1c   :  { %1584 = vmatmul.mubr.msk.bf16.vlgmr.msra.gmra.mrb[0].mxu0 %vm119_vm0, %v46_v7  ;;  %1588 = vmatmul.mubr.msk.bf16.vlgmr.msra.gmra.mrb[0].mxu1 %vm119_vm0, %v46_v7  ;;  %v1824_v30 = vld [vmem:[#allocation2 + $0x48] ss:$16 sps:$4 sm:$0xff]   ;;  %v48_v31 = vpack.c.bf16 %v43_v28, %v42_v27  ;;  %v1832_v32 = vld [vmem:[#allocation2 + $0x6c] ss:$16 sps:$4 sm:$0xff]   ;;  %v1833_v35 = vld [vmem:[#allocation2 + $0x80] ss:$16 sps:$4 sm:$0xff]  }
  0x1d   :  { %174 = vmatprep.mubr.bf16.mxu0 %v2028_v0  ;;  %1116 = vmatpush1.bf16.msra.mxu0 %v1809_v12  ;;  %v1830_v33 = vld [vmem:[#allocation2 + $0x68] ss:$16 sps:$4 sm:$0xff]   ;;  %v1841_v36 = vld [vmem:[#allocation2 + $0xa4] ss:$16 sps:$4 sm:$0xff]   ;;  %v1838_v37 = vld [vmem:[#allocation2 + $0x8c] ss:$16 sps:$4 sm:$0xff]  }
  0x1e   :  { %1117 = vmatprep.subr.bf16.mxu0 %v1817_v17  ;;  %247 = vmatprep.mubr.bf16.mxu1 %v2028_v0  ;;  %v44_v38 = vld [vmem:[%s2346_s0 + $0x30] sm:$0xff]  ;;  %v45_v39 = vld [vmem:[%s2346_s0 + $0x38] sm:$0xff] }
  0x1f   :  { %1262 = vmatpush1.bf16.msra.mxu1 %v1812_v19  ;;  %v1839_v40 = vld [vmem:[#allocation2 + $0xa0] ss:$16 sps:$4 sm:$0xff]   ;;  %v1836_v41 = vld [vmem:[#allocation2 + $0x88] ss:$16 sps:$4 sm:$0xff]   ;;  %v49_v42 = vpack.c.bf16 %v45_v39, %v44_v38  ;;  %v1844_v43 = vld [vmem:[#allocation2 + $0xac] ss:$16 sps:$4 sm:$0xff]  }
  0x20   :  { %1263 = vmatprep.subr.bf16.mxu1 %v1820_v21  ;;  %v1842_v44 = vld [vmem:[#allocation2 + $0xa8] ss:$16 sps:$4 sm:$0xff]   ;;  %v1847_v45 = vld [vmem:[#allocation2 + $0xc4] ss:$16 sps:$4 sm:$0xff]   ;;  %v1845_v46 = vld [vmem:[#allocation2 + $0xc0] ss:$16 sps:$4 sm:$0xff]  }
  0x21   :  { %1118 = vmatpush1.bf16.msra.mxu0 %v1815_v18  ;;  %v1853_v47 = vld [vmem:[#allocation2 + $0xe4] ss:$16 sps:$4 sm:$0xff]   ;;  %v1850_v48 = vld [vmem:[#allocation2 + $0xcc] ss:$16 sps:$4 sm:$0xff]   ;;  %v1848_v49 = vld [vmem:[#allocation2 + $0xc8] ss:$16 sps:$4 sm:$0xff]  }
  0x22   :  { %1119 = vmatprep.subr.bf16.mxu0 %v1823_v23  ;;  %v1851_v50 = vld [vmem:[#allocation2 + $0xe0] ss:$16 sps:$4 sm:$0xff]   ;;  %v1859_v51 = vld [vmem:[#allocation2 + $0x104] ss:$16 sps:$4 sm:$0xff]   ;;  %v1856_v52 = vld [vmem:[#allocation2 + $0xec] ss:$16 sps:$4 sm:$0xff]   ;;  %v59_v23 = vlaneseq }
  0x23   :  { %1264 = vmatpush1.bf16.msra.mxu1 %v1818_v22  ;;  %v1854_v53 = vld [vmem:[#allocation2 + $0xe8] ss:$16 sps:$4 sm:$0xff]   ;;  %v1857_v54 = vld [vmem:[#allocation2 + $0x100] ss:$16 sps:$4 sm:$0xff]   ;;  %v1865_v55 = vld [vmem:[#allocation2 + $0x124] ss:$16 sps:$4 sm:$0xff]  }
  0x24   :  { %1585 = vmatmul.mubr.msk.bf16.gmra.mrb[4].mxu0 %vm119_vm0, %v47_v20  ;;  %1265 = vmatprep.subr.bf16.mxu1 %v1826_v26  ;;  %v1862_v56 = vld [vmem:[#allocation2 + $0x10c] ss:$16 sps:$4 sm:$0xff]   ;;  %v1860_v57 = vld [vmem:[#allocation2 + $0x108] ss:$16 sps:$4 sm:$0xff]   ;;  %v1863_v58 = vld [vmem:[#allocation2 + $0x120] ss:$16 sps:$4 sm:$0xff]  }
  0x25   :  { %184 = vmatprep.mubr.bf16.mxu0 %v2028_v0  ;;  %1120 = vmatpush1.bf16.msra.mxu0 %v1821_v24  ;;  %v1868_v59 = vld [vmem:[#allocation2 + $0x12c] ss:$16 sps:$4 sm:$0xff]   ;;  %v1871_v60 = vld [vmem:[#allocation2 + $0x144] ss:$16 sps:$4 sm:$0xff]   ;;  %v1869_v61 = vld [vmem:[#allocation2 + $0x140] ss:$16 sps:$4 sm:$0xff]  }
  0x26   :  { %1121 = vmatprep.subr.bf16.mxu0 %v1829_v25  ;;  %1589 = vmatmul.mubr.msk.bf16.gmra.mrb[4].mxu1 %vm119_vm0, %v47_v20  ;;  %v1866_v62 = vld [vmem:[#allocation2 + $0x128] ss:$16 sps:$4 sm:$0xff]   ;;  %v1877_v63 = vld [vmem:[#allocation2 + $0x164] ss:$16 sps:$4 sm:$0xff]   ;;  %v1875_v1 = vld [vmem:[#allocation2 + $0x160] ss:$16 sps:$4 sm:$0xff]  }
  0x27   :  { %257 = vmatprep.mubr.bf16.mxu1 %v2028_v0  ;;  %1266 = vmatpush1.bf16.msra.mxu1 %v1824_v30  ;;  %v1872_v2 = vld [vmem:[#allocation2 + $0x148] ss:$16 sps:$4 sm:$0xff]   ;;  %v1883_v3 = vld [vmem:[#allocation2 + $0x184] ss:$16 sps:$4 sm:$0xff]   ;;  %v1880_v4 = vld [vmem:[#allocation2 + $0x16c] ss:$16 sps:$4 sm:$0xff]  }
  0x28   :  { %1267 = vmatprep.subr.bf16.mxu1 %v1832_v32  ;;  %v1881_v5 = vld [vmem:[#allocation2 + $0x180] ss:$16 sps:$4 sm:$0xff]   ;;  %v1878_v6 = vld [vmem:[#allocation2 + $0x168] ss:$16 sps:$4 sm:$0xff]   ;;  %v1889_v7 = vld [vmem:[#allocation2 + $0x1a4] ss:$16 sps:$4 sm:$0xff]  }
  0x29   :  { %1122 = vmatpush1.bf16.msra.mxu0 %v1827_v29  ;;  %v1886_v8 = vld [vmem:[#allocation2 + $0x18c] ss:$16 sps:$4 sm:$0xff]   ;;  %v1887_v9 = vld [vmem:[#allocation2 + $0x1a0] ss:$16 sps:$4 sm:$0xff]   ;;  %v1884_v10 = vld [vmem:[#allocation2 + $0x188] ss:$16 sps:$4 sm:$0xff]  }
  0x2a   :  { %1123 = vmatprep.subr.bf16.mxu0 %v1835_v34  ;;  %v1892_v11 = vld [vmem:[#allocation2 + $0x1ac] ss:$16 sps:$4 sm:$0xff]   ;;  %v1890_v12 = vld [vmem:[#allocation2 + $0x1a8] ss:$16 sps:$4 sm:$0xff]   ;;  %v1895_v13 = vld [vmem:[#allocation2 + $0x1c4] ss:$16 sps:$4 sm:$0xff]  }
  0x2b   :  { %1268 = vmatpush1.bf16.msra.mxu1 %v1830_v33  ;;  %v1898_v14 = vld [vmem:[#allocation2 + $0x1cc] ss:$16 sps:$4 sm:$0xff]   ;;  %v1893_v15 = vld [vmem:[#allocation2 + $0x1c0] ss:$16 sps:$4 sm:$0xff]   ;;  %v1896_v16 = vld [vmem:[#allocation2 + $0x1c8] ss:$16 sps:$4 sm:$0xff]  }
  0x2c   :  { %1586 = vmatmul.mubr.msk.bf16.gmra.mrb[8].mxu0 %vm119_vm0, %v48_v31  ;;  %1269 = vmatprep.subr.bf16.mxu1 %v1838_v37  ;;  %v1901_v17 = vld [vmem:[#allocation2 + $0x1e4] ss:$16 sps:$4 sm:$0xff]   ;;  %v1904_v18 = vld [vmem:[#allocation2 + $0x1ec] ss:$16 sps:$4 sm:$0xff]   ;;  %v1899_v19 = vld [vmem:[#allocation2 + $0x1e0] ss:$16 sps:$4 sm:$0xff]  }
  0x2d   :  { %194 = vmatprep.mubr.bf16.mxu0 %v2028_v0  ;;  %1124 = vmatpush1.bf16.msra.mxu0 %v1833_v35  ;;  %v1902_v20 = vld [vmem:[#allocation2 + $0x1e8] ss:$16 sps:$4 sm:$0xff]   ;;  %v1907_v21 = vld [vmem:[#allocation2 + $0x204] ss:$16 sps:$4 sm:$0xff]   ;;  %v1910_v22 = vld [vmem:[#allocation2 + $0x20c] ss:$16 sps:$4 sm:$0xff]  }
  0x2e   :  { %1125 = vmatprep.subr.bf16.mxu0 %v1841_v36  ;;  %1590 = vmatmul.mubr.msk.bf16.gmra.mrb[8].mxu1 %vm119_vm0, %v48_v31  ;;  %v60_v24 = vshrl.u32 %v59_v23, 7  ;;  %v32_v26 = vld [vmem:[%s2349_s3] ss:$4 sm:$0xf] }
  0x2f   :  { %267 = vmatprep.mubr.bf16.mxu1 %v2028_v0  ;;  %1270 = vmatpush1.bf16.msra.mxu1 %v1836_v41  ;;  %v1874_v0 = vld [vmem:[#allocation2 + $0x14c] ss:$16 sps:$4 sm:$0xff]   ;;  %v1920_v23 = vld [vmem:[#allocation2 + $0x248] ss:$16 sps:$4 sm:$0xff]  }
  0x30   :  { %1271 = vmatprep.subr.bf16.mxu1 %v1844_v43  ;;  %v2130_v25 = vsub.s32 0, %v60_v24  ;;  %v2135_v27 = vsub.s32 1, %v60_v24  ;;  %v2143_v30 = vsub.s32 2, %v60_v24  ;;  %v2145_v32 = vsub.s32 3, %v60_v24  ;;  %v1925_v24 = vld [vmem:[#allocation2 + $0x264] ss:$16 sps:$4 sm:$0xff]  }
  0x31   :  { %1126 = vmatpush1.bf16.msra.mxu0 %v1839_v40 }
  0x32   :  { %1127 = vmatprep.subr.bf16.mxu0 %v1847_v45  ;;  %v2138_v28 = vrot.slane %v32_v26, %v2130_v25  ;;  %v2141_v29 = vrot.slane %v32_v26, %v2135_v27  ;;  %v2151_v39 = vrot.slane %v32_v26, %v2143_v30  ;;  %v2155_v41 = vrot.slane %v32_v26, %v2145_v32 }
  0x33   :  { %1272 = vmatpush1.bf16.msra.mxu1 %v1842_v44 }
  0x34   :  { %1587 = vmatmul.mubr.msk.bf16.gmra.mrb[12].mxu0 %vm119_vm0, %v49_v42  ;;  %1273 = vmatprep.subr.bf16.mxu1 %v1850_v48  ;;  %v1905_v48 = vld [vmem:[#allocation2 + $0x200] ss:$16 sps:$4 sm:$0xff]  }
  0x35   :  { %1128 = vmatpush1.bf16.msra.mxu0 %v1845_v46 }
  0x36   :  { %1129 = vmatprep.subr.bf16.mxu0 %v1853_v47  ;;  %1591 = vmatmul.mubr.msk.bf16.gmra.mrb[12].mxu1 %vm119_vm0, %v49_v42 }
  0x37   :  { %1274 = vmatpush1.bf16.msra.mxu1 %v1848_v49 }
  0x38   :  { %1275 = vmatprep.subr.bf16.mxu1 %v1856_v52  ;;  %v1908_v52 = vld [vmem:[#allocation2 + $0x208] ss:$16 sps:$4 sm:$0xff]  }
  0x39   :  { %1130 = vmatpush1.bf16.msra.mxu0 %v1851_v50 }
  0x3a   :  { %1131 = vmatprep.subr.bf16.mxu0 %v1859_v51 }
  0x3b   :  { %1276 = vmatpush1.bf16.msra.mxu1 %v1854_v53  ;;  %v1913_v53 = vld [vmem:[#allocation2 + $0x224] ss:$16 sps:$4 sm:$0xff]  }
  0x3c   :  { %1277 = vmatprep.subr.bf16.mxu1 %v1862_v56 }
  0x3d   :  { %1132 = vmatpush1.bf16.msra.mxu0 %v1857_v54 }
  0x3e   :  { %1133 = vmatprep.subr.bf16.mxu0 %v1865_v55 }
  0x3f   :  { %1278 = vmatpush1.bf16.msra.mxu1 %v1860_v57  ;;  %v1916_v57 = vld [vmem:[#allocation2 + $0x22c] ss:$16 sps:$4 sm:$0xff]  }
  0x40   :  { %1279 = vmatprep.subr.bf16.mxu1 %v1868_v59 }
  0x41   :  { %1134 = vmatpush1.bf16.msra.mxu0 %v1863_v58 }
  0x42   :  { %1135 = vmatprep.subr.bf16.mxu0 %v1871_v60 }
  0x43   :  { %1280 = vmatpush1.bf16.msra.mxu1 %v1866_v62 }
  0x44   :  { %1281 = vmatprep.subr.bf16.mxu1 %v1874_v0 }
  0x45   :  { %1136 = vmatpush1.bf16.msra.mxu0 %v1869_v61 }
  0x46   :  { %1137 = vmatprep.subr.bf16.mxu0 %v1877_v63 }
  0x47   :  { %1282 = vmatpush1.bf16.msra.mxu1 %v1872_v2 }
  0x48   :  { %1283 = vmatprep.subr.bf16.mxu1 %v1880_v4 }
  0x49   :  { %1138 = vmatpush1.bf16.msra.mxu0 %v1875_v1 }
  0x4a   :  { %1139 = vmatprep.subr.bf16.mxu0 %v1883_v3 }
  0x4b   :  { %1284 = vmatpush1.bf16.msra.mxu1 %v1878_v6 }
  0x4c   :  { %1285 = vmatprep.subr.bf16.mxu1 %v1886_v8  ;;  %v1914_v8 = vld [vmem:[#allocation2 + $0x228] ss:$16 sps:$4 sm:$0xff]  }
  0x4d   :  { %1140 = vmatpush1.bf16.msra.mxu0 %v1881_v5 }
  0x4e   :  { %1141 = vmatprep.subr.bf16.mxu0 %v1889_v7  ;;  %v1911_v7 = vld [vmem:[#allocation2 + $0x220] ss:$16 sps:$4 sm:$0xff]  }
  0x4f   :  { %1286 = vmatpush1.bf16.msra.mxu1 %v1884_v10 }
  0x50   :  { %1287 = vmatprep.subr.bf16.mxu1 %v1892_v11 }
  0x51   :  { %1142 = vmatpush1.bf16.msra.mxu0 %v1887_v9 }
  0x52   :  { %1143 = vmatprep.subr.bf16.mxu0 %v1895_v13  ;;  %v1922_v13 = vld [vmem:[#allocation2 + $0x24c] ss:$16 sps:$4 sm:$0xff]  }
  0x53   :  { %1288 = vmatpush1.bf16.msra.mxu1 %v1890_v12  ;;  %v1919_v12 = vld [vmem:[#allocation2 + $0x244] ss:$16 sps:$4 sm:$0xff]  }
  0x54   :  { %1289 = vmatprep.subr.bf16.mxu1 %v1898_v14 }
  0x55   :  { %1144 = vmatpush1.bf16.msra.mxu0 %v1893_v15 }
  0x56   :  { %1145 = vmatprep.subr.bf16.mxu0 %v1901_v17 }
  0x57   :  { %1290 = vmatpush1.bf16.msra.mxu1 %v1896_v16 }
  0x58   :  { %1291 = vmatprep.subr.bf16.mxu1 %v1904_v18 }
  0x59   :  { %1146 = vmatpush1.bf16.msra.mxu0 %v1899_v19  ;;  %v1917_v19 = vld [vmem:[#allocation2 + $0x240] ss:$16 sps:$4 sm:$0xff]  }
  0x5a   :  { %1188 = vmatprep.subr.bf16.mxu0 %v1907_v21 }
  0x5b   :  { %1292 = vmatpush1.bf16.msra.mxu1 %v1902_v20 }
  0x5c   :  { %1334 = vmatprep.subr.bf16.mxu1 %v1910_v22 }
  0xef   :  { %v166_v31 = vpop.f32.mrb[0].mxu0  ;;  %v239_v46 = vpop.f32.mrb[0].mxu1 }
  0xf0   :  { %v167_v33 = vadd.f32 %v166_v31, %v2138_v28  ;;  %v168_v34 = vpop.f32.mrb[1].mxu0  ;;  %v240_v49 = vadd.f32 %v239_v46, %v2151_v39  ;;  %v241_v50 = vpop.f32.mrb[1].mxu1 }
  0xf1   :  { %v169_v35 = vadd.f32 %v168_v34, %v2141_v29  ;;  %v170_v36 = vpop.f32.mrb[2].mxu0  ;;  %v242_v55 = vadd.f32 %v241_v50, %v2155_v41  ;;  %v243_v56 = vpop.f32.mrb[2].mxu1 }
  0xf2   :  { %v171_v37 = vadd.f32 %v170_v36, %v2138_v28  ;;  %v172_v38 = vpop.f32.mrb[3].mxu0  ;;  %v278_v42 = vmax.f32 %v167_v33, 0.0  ;;  %v280_v60 = vmax.f32 %v240_v49, 0.0  ;;  %v244_v61 = vadd.f32 %v243_v56, %v2151_v39  ;;  %v245_v62 = vpop.f32.mrb[3].mxu1  ;;  %v1931_v56 = vld [vmem:[#allocation2 + $0x284] ss:$16 sps:$4 sm:$0xff]  }
  0xf3   :  { %v173_v40 = vadd.f32 %v172_v38, %v2141_v29  ;;  %v279_v44 = vmax.f32 %v169_v35, 0.0  ;;  %v281_v1 = vmax.f32 %v242_v55, 0.0  ;;  %v246_v2 = vadd.f32 %v245_v62, %v2155_v41  ;;  %v1928_v35 = vld [vmem:[#allocation2 + $0x26c] ss:$16 sps:$4 sm:$0xff]  }
  0xf4   :  { %v282_v43 = vmax.f32 %v171_v37, 0.0  ;;  %v284_v6 = vmax.f32 %v244_v61, 0.0 }
  0xf5   :  { %v283_v45 = vmax.f32 %v173_v40, 0.0  ;;  %v285_v11 = vmax.f32 %v246_v2, 0.0 }
  0xf6   :  { %v310_v47 = vpack.c.bf16 %v282_v43, %v278_v42  ;;  %v2165_v15 = vpack.c.bf16 %v284_v6, %v280_v60 }
  0xf7   :  { %v311_v51 = vpack.c.bf16 %v283_v45, %v279_v44  ;;  %v176_v54 = vpop.f32.mrb[4].mxu0  ;;  %v2167_v17 = vpack.c.bf16 %v285_v11, %v281_v1 }
  0xf8   :  { %v177_v58 = vadd.f32 %v176_v54, %v2138_v28  ;;  %v178_v59 = vpop.f32.mrb[5].mxu0 }
  0xf9   :  { %1147 = vmatprep.mubr.bf16.mxu0 %v311_v51  ;;  %1293 = vmatprep.mubr.bf16.mxu1 %v311_v51  ;;  %v179_v63 = vadd.f32 %v178_v59, %v2141_v29  ;;  %v180_v0 = vpop.f32.mrb[6].mxu0  ;;  %v249_v18 = vpop.f32.mrb[4].mxu1  ;;  %v1923_v51 = vld [vmem:[#allocation2 + $0x260] ss:$16 sps:$4 sm:$0xff]  }
  0xfa   :  { %1148 = vmatmul.mubr.bf16.vlgmr.msra.gmra.mrb[16].mxu0 %v310_v47  ;;  %1294 = vmatmul.mubr.bf16.vlgmr.msra.gmra.mrb[16].mxu1 %v310_v47  ;;  %v286_v3 = vmax.f32 %v177_v58, 0.0  ;;  %v181_v4 = vadd.f32 %v180_v0, %v2138_v28  ;;  %v182_v5 = vpop.f32.mrb[7].mxu0  ;;  %v250_v21 = vadd.f32 %v249_v18, %v2151_v39  ;;  %v251_v22 = vpop.f32.mrb[5].mxu1 }
  0xfb   :  { %1189 = vmatpush1.bf16.msra.mxu0 %v1905_v48  ;;  %1335 = vmatpush1.bf16.msra.mxu1 %v1908_v52  ;;  %v287_v9 = vmax.f32 %v179_v63, 0.0  ;;  %v183_v10 = vadd.f32 %v182_v5, %v2141_v29  ;;  %v252_v33 = vadd.f32 %v251_v22, %v2155_v41  ;;  %v253_v34 = vpop.f32.mrb[6].mxu1  ;;  %v1926_v52 = vld [vmem:[#allocation2 + $0x268] ss:$16 sps:$4 sm:$0xff]   ;;  %v1929_v63 = vld [vmem:[#allocation2 + $0x280] ss:$16 sps:$4 sm:$0xff]  }
  0xfc   :  { %1190 = vmatprep.subr.bf16.mxu0 %v1913_v53  ;;  %1336 = vmatprep.subr.bf16.mxu1 %v1916_v57  ;;  %v290_v14 = vmax.f32 %v181_v4, 0.0  ;;  %v288_v38 = vmax.f32 %v250_v21, 0.0  ;;  %v254_v40 = vadd.f32 %v253_v34, %v2151_v39  ;;  %v255_v42 = vpop.f32.mrb[7].mxu1  ;;  %v1934_v57 = vld [vmem:[#allocation2 + $0x28c] ss:$16 sps:$4 sm:$0xff]  }
  0xfd   :  { %v291_v16 = vmax.f32 %v183_v10, 0.0  ;;  %v289_v45 = vmax.f32 %v252_v33, 0.0  ;;  %v256_v46 = vadd.f32 %v255_v42, %v2155_v41  ;;  %v1937_v4 = vld [vmem:[#allocation2 + $0x2a4] ss:$16 sps:$4 sm:$0xff]  }
  0xfe   :  { %v314_v20 = vpack.c.bf16 %v290_v14, %v286_v3  ;;  %v292_v50 = vmax.f32 %v254_v40, 0.0  ;;  %v1932_v3 = vld [vmem:[#allocation2 + $0x288] ss:$16 sps:$4 sm:$0xff]  }
  0xff   :  { %1191 = vmatpush1.bf16.msra.mxu0 %v1911_v7  ;;  %1337 = vmatpush1.bf16.msra.mxu1 %v1914_v8  ;;  %v315_v26 = vpack.c.bf16 %v291_v16, %v287_v9  ;;  %v186_v31 = vpop.f32.mrb[8].mxu0  ;;  %v293_v55 = vmax.f32 %v256_v46, 0.0  ;;  %v1940_v9 = vld [vmem:[#allocation2 + $0x2ac] ss:$16 sps:$4 sm:$0xff]  }
 0x100   :  { %1192 = vmatprep.subr.bf16.mxu0 %v1919_v12  ;;  %1338 = vmatprep.subr.bf16.mxu1 %v1922_v13  ;;  %v187_v36 = vadd.f32 %v186_v31, %v2138_v28  ;;  %v188_v37 = vpop.f32.mrb[9].mxu0  ;;  %v2177_v59 = vpack.c.bf16 %v292_v50, %v288_v38  ;;  %v1938_v31 = vld [vmem:[#allocation2 + $0x2a8] ss:$16 sps:$4 sm:$0xff]  }
 0x101   :  { %v189_v43 = vadd.f32 %v188_v37, %v2141_v29  ;;  %v190_v44 = vpop.f32.mrb[10].mxu0  ;;  %1157 = vmatprep.mubr.bf16.mxu0 %v315_v26  ;;  %1303 = vmatprep.mubr.bf16.mxu1 %v315_v26  ;;  %v2179_v61 = vpack.c.bf16 %v293_v55, %v289_v45  ;;  %v259_v62 = vpop.f32.mrb[8].mxu1  ;;  %v1935_v26 = vld [vmem:[#allocation2 + $0x2a0] ss:$16 sps:$4 sm:$0xff]   ;;  %v1946_v37 = vld [vmem:[#allocation2 + $0x2cc] ss:$16 sps:$4 sm:$0xff]  }
 0x102   :  { %v294_v47 = vmax.f32 %v187_v36, 0.0  ;;  %v191_v48 = vadd.f32 %v190_v44, %v2138_v28  ;;  %v192_v49 = vpop.f32.mrb[11].mxu0  ;;  %1158 = vmatmul.mubr.bf16.gmra.mrb[20].mxu0 %v314_v20  ;;  %1304 = vmatmul.mubr.bf16.gmra.mrb[20].mxu1 %v314_v20  ;;  %v260_v1 = vadd.f32 %v259_v62, %v2151_v39  ;;  %v261_v2 = vpop.f32.mrb[9].mxu1  ;;  %v1943_v36 = vld [vmem:[#allocation2 + $0x2c4] ss:$16 sps:$4 sm:$0xff]  }
 0x103   :  { %1193 = vmatpush1.bf16.msra.mxu0 %v1917_v19  ;;  %1339 = vmatpush1.bf16.msra.mxu1 %v1920_v23  ;;  %v295_v53 = vmax.f32 %v189_v43, 0.0  ;;  %v193_v54 = vadd.f32 %v192_v49, %v2141_v29  ;;  %v262_v7 = vadd.f32 %v261_v2, %v2155_v41  ;;  %v263_v8 = vpop.f32.mrb[10].mxu1  ;;  %v1950_v62 = vld [vmem:[#allocation2 + $0x2e8] ss:$16 sps:$4 sm:$0xff]  }
 0x104   :  { %1194 = vmatprep.subr.bf16.mxu0 %v1925_v24  ;;  %1340 = vmatprep.subr.bf16.mxu1 %v1928_v35  ;;  %v298_v58 = vmax.f32 %v191_v48, 0.0  ;;  %v296_v12 = vmax.f32 %v260_v1, 0.0  ;;  %v264_v13 = vadd.f32 %v263_v8, %v2151_v39  ;;  %v265_v14 = vpop.f32.mrb[11].mxu1  ;;  %v1958_v1 = vld [vmem:[#allocation2 + $0x30c] ss:$16 sps:$4 sm:$0xff]  }
 0x105   :  { %v299_v60 = vmax.f32 %v193_v54, 0.0  ;;  %v297_v19 = vmax.f32 %v262_v7, 0.0  ;;  %v266_v20 = vadd.f32 %v265_v14, %v2155_v41  ;;  %v1962_v7 = vld [vmem:[#allocation2 + $0x328] ss:$16 sps:$4 sm:$0xff]   ;;  %v1967_v8 = vld [vmem:[#allocation2 + $0x344] ss:$16 sps:$4 sm:$0xff]  }
 0x106   :  { %v318_v0 = vpack.c.bf16 %v298_v58, %v294_v47  ;;  %v300_v24 = vmax.f32 %v264_v13, 0.0  ;;  %v1941_v47 = vld [vmem:[#allocation2 + $0x2c0] ss:$16 sps:$4 sm:$0xff]   ;;  %v1974_v14 = vld [vmem:[#allocation2 + $0x368] ss:$16 sps:$4 sm:$0xff]  }
 0x107   :  { %1195 = vmatpush1.bf16.msra.mxu0 %v1923_v51  ;;  %1341 = vmatpush1.bf16.msra.mxu1 %v1926_v52  ;;  %v319_v5 = vpack.c.bf16 %v299_v60, %v295_v53  ;;  %v196_v6 = vpop.f32.mrb[12].mxu0  ;;  %v301_v35 = vmax.f32 %v266_v20, 0.0  ;;  %v1949_v51 = vld [vmem:[#allocation2 + $0x2e4] ss:$16 sps:$4 sm:$0xff]   ;;  %v1952_v52 = vld [vmem:[#allocation2 + $0x2ec] ss:$16 sps:$4 sm:$0xff]  }
 0x108   :  { %1196 = vmatprep.subr.bf16.mxu0 %v1931_v56  ;;  %1342 = vmatprep.subr.bf16.mxu1 %v1934_v57  ;;  %v197_v10 = vadd.f32 %v196_v6, %v2138_v28  ;;  %v198_v11 = vpop.f32.mrb[13].mxu0  ;;  %v2189_v40 = vpack.c.bf16 %v300_v24, %v296_v12  ;;  %v1947_v60 = vld [vmem:[#allocation2 + $0x2e0] ss:$16 sps:$4 sm:$0xff]   ;;  %v1976_v12 = vld [vmem:[#allocation2 + $0x36c] ss:$16 sps:$4 sm:$0xff]  }
 0x109   :  { %v199_v16 = vadd.f32 %v198_v11, %v2141_v29  ;;  %v200_v18 = vpop.f32.mrb[14].mxu0  ;;  %1167 = vmatprep.mubr.bf16.mxu0 %v319_v5  ;;  %1313 = vmatprep.mubr.bf16.mxu1 %v319_v5  ;;  %v2191_v42 = vpack.c.bf16 %v301_v35, %v297_v19  ;;  %v269_v43 = vpop.f32.mrb[12].mxu1  ;;  %v1964_v5 = vld [vmem:[#allocation2 + $0x32c] ss:$16 sps:$4 sm:$0xff]   ;;  %v1959_v6 = vld [vmem:[#allocation2 + $0x320] ss:$16 sps:$4 sm:$0xff]  }
 0x10a   :  { %v302_v21 = vmax.f32 %v197_v10, 0.0  ;;  %v201_v22 = vadd.f32 %v200_v18, %v2138_v28  ;;  %v202_v23 = vpop.f32.mrb[15].mxu0  ;;  %1168 = vmatmul.mubr.bf16.gmra.mrb[24].mxu0 %v318_v0  ;;  %1314 = vmatmul.mubr.bf16.gmra.mrb[24].mxu1 %v318_v0  ;;  %v270_v45 = vadd.f32 %v269_v43, %v2151_v39  ;;  %v271_v46 = vpop.f32.mrb[13].mxu1  ;;  %v1955_v0 = vld [vmem:[#allocation2 + $0x304] ss:$16 sps:$4 sm:$0xff]  }
 0x10b   :  { %1197 = vmatpush1.bf16.msra.mxu0 %v1929_v63  ;;  %1343 = vmatpush1.bf16.msra.mxu1 %v1932_v3  ;;  %v303_v33 = vmax.f32 %v199_v16, 0.0  ;;  %v203_v34 = vadd.f32 %v202_v23, %v2141_v29  ;;  %v1944_v29 = vld [vmem:[#allocation2 + $0x2c8] ss:$16 sps:$4 sm:$0xff]   ;;  %v272_v49 = vadd.f32 %v271_v46, %v2155_v41  ;;  %v273_v50 = vpop.f32.mrb[14].mxu1  ;;  %v1973_v11 = vld [vmem:[#allocation2 + $0x364] ss:$16 sps:$4 sm:$0xff]  }
 0x10c   :  { %1198 = vmatprep.subr.bf16.mxu0 %v1937_v4  ;;  %1344 = vmatprep.subr.bf16.mxu1 %v1940_v9  ;;  %v306_v38 = vmax.f32 %v201_v22, 0.0  ;;  %v304_v53 = vmax.f32 %v270_v45, 0.0  ;;  %v274_v54 = vadd.f32 %v273_v50, %v2151_v39  ;;  %v275_v55 = vpop.f32.mrb[15].mxu1  ;;  %v1956_v3 = vld [vmem:[#allocation2 + $0x308] ss:$16 sps:$4 sm:$0xff]  }
 0x10d   :  { %v307_v28 = vmax.f32 %v203_v34, 0.0  ;;  %v305_v56 = vmax.f32 %v272_v49, 0.0  ;;  %v276_v57 = vadd.f32 %v275_v55, %v2155_v41  ;;  %v1953_v41 = vld [vmem:[#allocation2 + $0x300] ss:$16 sps:$4 sm:$0xff]   ;;  %v1961_v4 = vld [vmem:[#allocation2 + $0x324] ss:$16 sps:$4 sm:$0xff]  }
 0x10e   :  { %v322_v44 = vpack.c.bf16 %v306_v38, %v302_v21  ;;  %v308_v58 = vmax.f32 %v274_v54, 0.0  ;;  %v1970_v9 = vld [vmem:[#allocation2 + $0x34c] ss:$16 sps:$4 sm:$0xff]   ;;  %v1968_v10 = vld [vmem:[#allocation2 + $0x348] ss:$16 sps:$4 sm:$0xff]  }
 0x10f   :  { %1199 = vmatpush1.bf16.msra.mxu0 %v1935_v26  ;;  %1345 = vmatpush1.bf16.msra.mxu1 %v1938_v31  ;;  %v323_v48 = vpack.c.bf16 %v307_v28, %v303_v33  ;;  %v309_v63 = vmax.f32 %v276_v57, 0.0  ;;  %v1971_v13 = vld [vmem:[#allocation2 + $0x360] ss:$16 sps:$4 sm:$0xff]   ;;  %v1979_v16 = vld [vmem:[#allocation2 + $0x384] ss:$16 sps:$4 sm:$0xff]  }
 0x110   :  { %1200 = vmatprep.subr.bf16.mxu0 %v1943_v36  ;;  %1346 = vmatprep.subr.bf16.mxu1 %v1946_v37  ;;  %v2197_v2 = vpack.c.bf16 %v308_v58, %v304_v53  ;;  %v1982_v18 = vld [vmem:[#allocation2 + $0x38c] ss:$16 sps:$4 sm:$0xff]   ;;  %v1977_v19 = vld [vmem:[#allocation2 + $0x380] ss:$16 sps:$4 sm:$0xff]   ;;  %v1980_v20 = vld [vmem:[#allocation2 + $0x388] ss:$16 sps:$4 sm:$0xff]  }
 0x111   :  { %1177 = vmatprep.mubr.bf16.mxu0 %v323_v48  ;;  %1323 = vmatprep.mubr.bf16.mxu1 %v323_v48  ;;  %v2201_v39 = vpack.c.bf16 %v309_v63, %v305_v56  ;;  %v1985_v21 = vld [vmem:[#allocation2 + $0x3a4] ss:$16 sps:$4 sm:$0xff]   ;;  %v1988_v22 = vld [vmem:[#allocation2 + $0x3ac] ss:$16 sps:$4 sm:$0xff]   ;;  %v1983_v23 = vld [vmem:[#allocation2 + $0x3a0] ss:$16 sps:$4 sm:$0xff]  }
 0x112   :  { %1178 = vmatmul.mubr.bf16.gmra.mrb[28].mxu0 %v322_v44  ;;  %1324 = vmatmul.mubr.bf16.gmra.mrb[28].mxu1 %v322_v44  ;;  %v1986_v24 = vld [vmem:[#allocation2 + $0x3a8] ss:$16 sps:$4 sm:$0xff]   ;;  %v1991_v26 = vld [vmem:[#allocation2 + $0x3c4] ss:$16 sps:$4 sm:$0xff]   ;;  %v1994_v31 = vld [vmem:[#allocation2 + $0x3cc] ss:$16 sps:$4 sm:$0xff]  }
 0x113   :  { %1201 = vmatpush1.bf16.msra.mxu0 %v1941_v47  ;;  %1347 = vmatpush1.bf16.msra.mxu1 %v1944_v29  ;;  %v1989_v33 = vld [vmem:[#allocation2 + $0x3c0] ss:$16 sps:$4 sm:$0xff]   ;;  %v1992_v34 = vld [vmem:[#allocation2 + $0x3c8] ss:$16 sps:$4 sm:$0xff]   ;;  %v1997_v35 = vld [vmem:[#allocation2 + $0x3e4] ss:$16 sps:$4 sm:$0xff]  }
 0x114   :  { %1202 = vmatprep.subr.bf16.mxu0 %v1949_v51  ;;  %1348 = vmatprep.subr.bf16.mxu1 %v1952_v52  ;;  %v2000_v36 = vld [vmem:[#allocation2 + $0x3ec] ss:$16 sps:$4 sm:$0xff]   ;;  %v1995_v37 = vld [vmem:[#allocation2 + $0x3e0] ss:$16 sps:$4 sm:$0xff]   ;;  %v1998_v38 = vld [vmem:[#allocation2 + $0x3e8] ss:$16 sps:$4 sm:$0xff]  }
 0x115   :  { %1220 = vmatprep.mubr.bf16.mxu0 %v2167_v17  ;;  %1366 = vmatprep.mubr.bf16.mxu1 %v2167_v17  ;;  %v1965_v17 = vld [vmem:[#allocation2 + $0x340] ss:$16 sps:$4 sm:$0xff]  }
 0x117   :  { %1203 = vmatpush1.bf16.msra.mxu0 %v1947_v60  ;;  %1349 = vmatpush1.bf16.msra.mxu1 %v1950_v62 }
 0x118   :  { %1204 = vmatprep.subr.bf16.mxu0 %v1955_v0  ;;  %1350 = vmatprep.subr.bf16.mxu1 %v1958_v1 }
 0x11b   :  { %1205 = vmatpush1.bf16.msra.mxu0 %v1953_v41  ;;  %1351 = vmatpush1.bf16.msra.mxu1 %v1956_v3 }
 0x11c   :  { %1206 = vmatprep.subr.bf16.mxu0 %v1961_v4  ;;  %1352 = vmatprep.subr.bf16.mxu1 %v1964_v5 }
 0x11f   :  { %1207 = vmatpush1.bf16.msra.mxu0 %v1959_v6  ;;  %1353 = vmatpush1.bf16.msra.mxu1 %v1962_v7 }
 0x120   :  { %1208 = vmatprep.subr.bf16.mxu0 %v1967_v8  ;;  %1354 = vmatprep.subr.bf16.mxu1 %v1970_v9 }
 0x123   :  { %1209 = vmatpush1.bf16.msra.mxu0 %v1965_v17  ;;  %1355 = vmatpush1.bf16.msra.mxu1 %v1968_v10 }
 0x124   :  { %1210 = vmatprep.subr.bf16.mxu0 %v1973_v11  ;;  %1356 = vmatprep.subr.bf16.mxu1 %v1976_v12 }
 0x127   :  { %1211 = vmatpush1.bf16.msra.mxu0 %v1971_v13  ;;  %1357 = vmatpush1.bf16.msra.mxu1 %v1974_v14 }
 0x128   :  { %1212 = vmatprep.subr.bf16.mxu0 %v1979_v16  ;;  %1358 = vmatprep.subr.bf16.mxu1 %v1982_v18 }
 0x12b   :  { %1213 = vmatpush1.bf16.msra.mxu0 %v1977_v19  ;;  %1359 = vmatpush1.bf16.msra.mxu1 %v1980_v20 }
 0x12c   :  { %1214 = vmatprep.subr.bf16.mxu0 %v1985_v21  ;;  %1360 = vmatprep.subr.bf16.mxu1 %v1988_v22 }
 0x12f   :  { %1215 = vmatpush1.bf16.msra.mxu0 %v1983_v23  ;;  %1361 = vmatpush1.bf16.msra.mxu1 %v1986_v24 }
 0x130   :  { %1216 = vmatprep.subr.bf16.mxu0 %v1991_v26  ;;  %1362 = vmatprep.subr.bf16.mxu1 %v1994_v31 }
 0x133   :  { %1217 = vmatpush1.bf16.msra.mxu0 %v1989_v33  ;;  %1363 = vmatpush1.bf16.msra.mxu1 %v1992_v34 }
 0x134   :  { %1218 = vmatprep.subr.bf16.mxu0 %v1997_v35  ;;  %1364 = vmatprep.subr.bf16.mxu1 %v2000_v36 }
 0x137   :  { %1219 = vmatpush1.bf16.msra.mxu0 %v1995_v37  ;;  %1365 = vmatpush1.bf16.msra.mxu1 %v1998_v38 }
 0x13a   :  { %1221 = vmatmul.mubr.bf16.vlgmr.msra.gmra.mrb[16].mxu0 %v2165_v15  ;;  %1367 = vmatmul.mubr.bf16.vlgmr.msra.gmra.mrb[16].mxu1 %v2165_v15  ;;  %v1574_v15 = vld [vmem:[%s2349_s3 + $0x1] ss:$4 sm:$0xf] }
 0x13b   :  { %1230 = vmatprep.mubr.bf16.mxu0 %v2179_v61  ;;  %1376 = vmatprep.mubr.bf16.mxu1 %v2179_v61  ;;  %v2224_v61 = vrot.slane %v1574_v15, %v2143_v30  ;;  %v2230_v28 = vrot.slane %v1574_v15, %v2135_v27  ;;  %v2233_v44 = vrot.slane %v1574_v15, %v2145_v32 }
 0x142   :  { %1231 = vmatmul.mubr.bf16.gmra.mrb[20].mxu0 %v2177_v59  ;;  %1377 = vmatmul.mubr.bf16.gmra.mrb[20].mxu1 %v2177_v59  ;;  %v2221_v59 = vrot.slane %v1574_v15, %v2130_v25 }
 0x143   :  { %1240 = vmatprep.mubr.bf16.mxu0 %v2191_v42  ;;  %1386 = vmatprep.mubr.bf16.mxu1 %v2191_v42 }
 0x14a   :  { %1241 = vmatmul.mubr.bf16.gmra.mrb[24].mxu0 %v2189_v40  ;;  %1387 = vmatmul.mubr.bf16.gmra.mrb[24].mxu1 %v2189_v40  ;;  %v1575_v40 = vld [vmem:[%s2349_s3 + $0x2] ss:$4 sm:$0xf] }
 0x14b   :  { %1250 = vmatprep.mubr.bf16.mxu0 %v2201_v39  ;;  %1396 = vmatprep.mubr.bf16.mxu1 %v2201_v39  ;;  %v2237_v46 = vrot.slane %v1575_v40, %v2130_v25  ;;  %v2242_v50 = vrot.slane %v1575_v40, %v2135_v27  ;;  %v2245_v54 = vrot.slane %v1575_v40, %v2143_v30 }
 0x14c   :  { %v2256_v41 = vrot.slane %v1575_v40, %v2145_v32 }
 0x152   :  { %1251 = vmatmul.mubr.bf16.gmra.mrb[28].mxu0 %v2197_v2  ;;  %1397 = vmatmul.mubr.bf16.gmra.mrb[28].mxu1 %v2197_v2 }
 0x20d   :  { %v1222_v42 = vpop.f32.mrb[16].mxu0  ;;  %v1368_v43 = vpop.f32.mrb[16].mxu1 }
 0x20e   :  { %v1729_v45 = vadd.f32 %v1222_v42, %v2221_v59  ;;  %v1745_v47 = vadd.f32 %v1368_v43, %v2224_v61  ;;  %v1224_v29 = vpop.f32.mrb[17].mxu0  ;;  %v1370_v48 = vpop.f32.mrb[17].mxu1 }
 0x20f   :  { %v1730_v49 = vadd.f32 %v1224_v29, %v2230_v28  ;;  %v1226_v51 = vpop.f32.mrb[18].mxu0  ;;  %v1372_v52 = vpop.f32.mrb[18].mxu1  ;;  %v1746_v60 = vadd.f32 %v1370_v48, %v2233_v44 }
 0x210   :  { %v1407_v53 = vmax.f32 %v1729_v45, 0.0  ;;  %v1731_v55 = vadd.f32 %v1226_v51, %v2221_v59  ;;  %v1228_v56 = vpop.f32.mrb[19].mxu0  ;;  %v1374_v25 = vpop.f32.mrb[19].mxu1  ;;  %v1409_v57 = vmax.f32 %v1745_v47, 0.0  ;;  %v1747_v0 = vadd.f32 %v1372_v52, %v2224_v61 }
 0x211   :  { %v1408_v58 = vmax.f32 %v1730_v49, 0.0  ;;  %v1732_v62 = vadd.f32 %v1228_v56, %v2230_v28  ;;  %v1748_v39 = vadd.f32 %v1374_v25, %v2233_v44  ;;  %v1410_v4 = vmax.f32 %v1746_v60, 0.0 }
 0x212   :  { %v1460_v63 = vmul.f32 %v2237_v46, %v1407_v53  ;;  %v1411_v27 = vmax.f32 %v1731_v55, 0.0  ;;  %v1462_v3 = vmul.f32 %v2245_v54, %v1409_v57  ;;  %v1413_v9 = vmax.f32 %v1747_v0, 0.0 }
 0x213   :  { %v1461_v1 = vmul.f32 %v2242_v50, %v1408_v58  ;;  %v1412_v2 = vmax.f32 %v1732_v62, 0.0  ;;  %v1414_v19 = vmax.f32 %v1748_v39, 0.0  ;;  %v1463_v34 = vmul.f32 %v2256_v41, %v1410_v4 }
 0x214   :  { %v1464_v30 = vmul.f32 %v2237_v46, %v1411_v27  ;;  %v1466_v35 = vmul.f32 %v2245_v54, %v1413_v9 }
 0x215   :  { %v1465_v5 = vmul.f32 %v2242_v50, %v1412_v2  ;;  %v1232_v6 = vpop.f32.mrb[20].mxu0  ;;  %v1378_v7 = vpop.f32.mrb[20].mxu1  ;;  %v1492_v8 = vadd.f32 %v1461_v1, %v1460_v63  ;;  %v1467_v45 = vmul.f32 %v2256_v41, %v1414_v19 }
 0x216   :  { %v1733_v17 = vadd.f32 %v1232_v6, %v2221_v59  ;;  %v1749_v10 = vadd.f32 %v1378_v7, %v2224_v61  ;;  %v1234_v11 = vpop.f32.mrb[21].mxu0  ;;  %v1380_v12 = vpop.f32.mrb[21].mxu1 }
 0x217   :  { %v1497_v13 = vadd.f32 %v1465_v5, %v1464_v30  ;;  %v1734_v14 = vadd.f32 %v1234_v11, %v2230_v28  ;;  %v1236_v32 = vpop.f32.mrb[22].mxu0  ;;  %v1382_v16 = vpop.f32.mrb[22].mxu1  ;;  %v1493_v18 = vadd.f32 %v1492_v8, %v1462_v3  ;;  %v1750_v37 = vadd.f32 %v1380_v12, %v2233_v44 }
 0x218   :  { %v1415_v20 = vmax.f32 %v1733_v17, 0.0  ;;  %v1735_v21 = vadd.f32 %v1236_v32, %v2221_v59  ;;  %v1751_v22 = vadd.f32 %v1382_v16, %v2224_v61  ;;  %v1238_v23 = vpop.f32.mrb[23].mxu0  ;;  %v1384_v24 = vpop.f32.mrb[23].mxu1  ;;  %v1417_v26 = vmax.f32 %v1749_v10, 0.0 }
 0x219   :  { %v1416_v31 = vmax.f32 %v1734_v14, 0.0  ;;  %v1736_v33 = vadd.f32 %v1238_v23, %v2230_v28  ;;  %v1752_v42 = vadd.f32 %v1384_v24, %v2233_v44  ;;  %v1494_v43 = vadd.f32 %v1493_v18, %v1463_v34 }
 0x21a   :  { %v1468_v36 = vmul.f32 %v2237_v46, %v1415_v20  ;;  %v1419_v38 = vmax.f32 %v1735_v21, 0.0  ;;  %v1421_v29 = vmax.f32 %v1751_v22, 0.0  ;;  %v1498_v48 = vadd.f32 %v1497_v13, %v1466_v35 }
 0x21b   :  { %v1469_v15 = vmul.f32 %v2242_v50, %v1416_v31  ;;  %v1420_v40 = vmax.f32 %v1736_v33, 0.0  ;;  %v1470_v49 = vmul.f32 %v2245_v54, %v1417_v26  ;;  %1495 = vadd.xlane.f32.xlu0 %v1494_v43  ;;  %v1418_v56 = vmax.f32 %v1750_v37, 0.0 }
 0x21c   :  { %v1472_v47 = vmul.f32 %v2237_v46, %v1419_v38  ;;  %v1499_v62 = vadd.f32 %v1498_v48, %v1467_v45  ;;  %v1422_v27 = vmax.f32 %v1752_v42, 0.0  ;;  %v1474_v39 = vmul.f32 %v2245_v54, %v1421_v29 }
 0x21d   :  { %v1473_v51 = vmul.f32 %v2242_v50, %v1420_v40  ;;  %v1242_v52 = vpop.f32.mrb[24].mxu0  ;;  %v1388_v53 = vpop.f32.mrb[24].mxu1  ;;  %v1502_v55 = vadd.f32 %v1469_v15, %v1468_v36  ;;  %v1471_v13 = vmul.f32 %v2256_v41, %v1418_v56 }
 0x21e   :  { %v1737_v25 = vadd.f32 %v1242_v52, %v2221_v59  ;;  %v1753_v57 = vadd.f32 %v1388_v53, %v2224_v61  ;;  %v1244_v58 = vpop.f32.mrb[25].mxu0  ;;  %v1390_v60 = vpop.f32.mrb[25].mxu1  ;;  %v1475_v14 = vmul.f32 %v2256_v41, %v1422_v27 }
 0x21f   :  { %v1507_v63 = vadd.f32 %v1473_v51, %v1472_v47  ;;  %v1738_v0 = vadd.f32 %v1244_v58, %v2230_v28  ;;  %v1246_v1 = vpop.f32.mrb[26].mxu0  ;;  %v1392_v2 = vpop.f32.mrb[26].mxu1  ;;  %v1503_v30 = vadd.f32 %v1502_v55, %v1470_v49  ;;  %v1754_v9 = vadd.f32 %v1390_v60, %v2233_v44  ;;  %1500 = vadd.xlane.f32.xlu0 %v1499_v62 }
 0x220   :  { %v1423_v3 = vmax.f32 %v1737_v25, 0.0  ;;  %v1739_v4 = vadd.f32 %v1246_v1, %v2221_v59  ;;  %v1248_v5 = vpop.f32.mrb[27].mxu0  ;;  %v1394_v6 = vpop.f32.mrb[27].mxu1  ;;  %v1425_v7 = vmax.f32 %v1753_v57, 0.0  ;;  %v1755_v12 = vadd.f32 %v1392_v2, %v2224_v61 }
 0x221   :  { %v1424_v8 = vmax.f32 %v1738_v0, 0.0  ;;  %v1740_v17 = vadd.f32 %v1248_v5, %v2230_v28  ;;  %v1756_v19 = vadd.f32 %v1394_v6, %v2233_v44  ;;  %v1504_v20 = vadd.f32 %v1503_v30, %v1471_v13 }
 0x222   :  { %v1476_v10 = vmul.f32 %v2237_v46, %v1423_v3  ;;  %v1427_v11 = vmax.f32 %v1739_v4, 0.0  ;;  %v1508_v21 = vadd.f32 %v1507_v63, %v1474_v39  ;;  %v1478_v22 = vmul.f32 %v2245_v54, %v1425_v7 }
 0x223   :  { %v1477_v32 = vmul.f32 %v2242_v50, %v1424_v8  ;;  %v1428_v16 = vmax.f32 %v1740_v17, 0.0  ;;  %v1426_v24 = vmax.f32 %v1754_v9, 0.0  ;;  %v1429_v34 = vmax.f32 %v1755_v12, 0.0  ;;  %1505 = vadd.xlane.f32.xlu1 %v1504_v20 }
 0x224   :  { %v1480_v18 = vmul.f32 %v2237_v46, %v1427_v11  ;;  %v1509_v15 = vadd.f32 %v1508_v21, %v1475_v14  ;;  %v1430_v48 = vmax.f32 %v1756_v19, 0.0 }
 0x225   :  { %v1512_v23 = vadd.f32 %v1477_v32, %v1476_v10  ;;  %v1481_v26 = vmul.f32 %v2242_v50, %v1428_v16  ;;  %v1252_v31 = vpop.f32.mrb[28].mxu0  ;;  %v1398_v33 = vpop.f32.mrb[28].mxu1  ;;  %v1479_v60 = vmul.f32 %v2256_v41, %v1426_v24  ;;  %v1482_v62 = vmul.f32 %v2245_v54, %v1429_v34 }
 0x226   :  { %v1741_v35 = vadd.f32 %v1252_v31, %v2221_v59  ;;  %v1757_v36 = vadd.f32 %v1398_v33, %v2224_v61  ;;  %v1254_v37 = vpop.f32.mrb[29].mxu0  ;;  %v1400_v38 = vpop.f32.mrb[29].mxu1  ;;  %v1483_v2 = vmul.f32 %v2256_v41, %v1430_v48 }
 0x227   :  { %v1517_v40 = vadd.f32 %v1481_v26, %v1480_v18  ;;  %v1742_v42 = vadd.f32 %v1254_v37, %v2230_v28  ;;  %v1758_v43 = vadd.f32 %v1400_v38, %v2233_v44  ;;  %v1256_v45 = vpop.f32.mrb[30].mxu0  ;;  %v1402_v47 = vpop.f32.mrb[30].mxu1  ;;  %v1513_v29 = vadd.f32 %v1512_v23, %v1478_v22  ;;  %1510 = vadd.xlane.f32.xlu1 %v1509_v15 }
 0x228   :  { %v1431_v49 = vmax.f32 %v1741_v35, 0.0  ;;  %v1743_v51 = vadd.f32 %v1256_v45, %v2221_v59  ;;  %v1759_v52 = vadd.f32 %v1402_v47, %v2224_v61  ;;  %v1258_v53 = vpop.f32.mrb[31].mxu0  ;;  %v1404_v55 = vpop.f32.mrb[31].mxu1  ;;  %v1433_v56 = vmax.f32 %v1757_v36, 0.0 }
 0x229   :  { %v1432_v25 = vmax.f32 %v1742_v42, 0.0  ;;  %v1744_v57 = vadd.f32 %v1258_v53, %v2230_v28  ;;  %v1760_v58 = vadd.f32 %v1404_v55, %v2233_v44  ;;  %v1434_v0 = vmax.f32 %v1758_v43, 0.0 }
 0x22a   :  { %v1484_v63 = vmul.f32 %v2237_v46, %v1431_v49  ;;  %v1435_v27 = vmax.f32 %v1743_v51, 0.0  ;;  %v1437_v61 = vmax.f32 %v1759_v52, 0.0  ;;  %v1514_v28 = vadd.f32 %v1513_v29, %v1479_v60 }
 0x22b   :  { %v1485_v59 = vmul.f32 %v2242_v50, %v1432_v25  ;;  %v1436_v1 = vmax.f32 %v1744_v57, 0.0  ;;  %v1518_v39 = vadd.f32 %v1517_v40, %v1482_v62  ;;  %v1486_v44 = vmul.f32 %v2245_v54, %v1433_v56 }
 0x22c   :  { %v1488_v30 = vmul.f32 %v2237_v46, %v1435_v27  ;;  %v1438_v5 = vmax.f32 %v1760_v58, 0.0  ;;  %1515 = vadd.xlane.f32.xlu0 %v1514_v28  ;;  %v1487_v7 = vmul.f32 %v2256_v41, %v1434_v0  ;;  %v1490_v8 = vmul.f32 %v2245_v54, %v1437_v61 }
 0x22d   :  { %v1522_v3 = vadd.f32 %v1485_v59, %v1484_v63  ;;  %v1489_v4 = vmul.f32 %v2242_v50, %v1436_v1  ;;  %v1519_v6 = vadd.f32 %v1518_v39, %v1483_v2  ;;  %v1720_v50 = vld [vmem:[%s2349_s3 + $0x3] ss:$0 sm:$0xff] }
 0x22e   :  { %v1491_v10 = vmul.f32 %v2256_v41, %v1438_v5 }
 0x22f   :  { %v1527_v9 = vadd.f32 %v1489_v4, %v1488_v30  ;;  %v1523_v17 = vadd.f32 %v1522_v3, %v1486_v44  ;;  %1520 = vadd.xlane.f32.xlu1 %v1519_v6 }
 0x231   :  { %v1524_v46 = vadd.f32 %v1523_v17, %v1487_v7  ;;  %v1528_v11 = vadd.f32 %v1527_v9, %v1490_v8 }
 0x233   :  { %1525 = vadd.xlane.f32.xlu0 %v1524_v46  ;;  %v1529_v12 = vadd.f32 %v1528_v11, %v1491_v10 }
 0x235   :  { %1530 = vadd.xlane.f32.xlu1 %v1529_v12 }
 0x2a8   :  { %v1496_v13 = vpop.xlane.xlu0 %1495 }
 0x2a9   :  { %v1536_v14 = vadd.f32 %v1720_v50, %v1496_v13 }
 0x2ab   :  { %v1721_v32 = vclamps-f32 %v1536_v14, 50.0 }
 0x2ac   :  { %v1501_v16 = vpop.xlane.xlu0 %1500 }
 0x2ad   :  { %1561 = vst.msk [vmem:[%s2350_s4] sm:$0xff] %vm1560_vm1, %v1721_v32  ;;  %v1537_v54 = vadd.f32 %v1720_v50, %v1501_v16 }
 0x2af   :  { %v1722_v41 = vclamps-f32 %v1537_v54, 50.0 }
 0x2b0   :  { %v1506_v18 = vpop.xlane.xlu1 %1505 }
 0x2b1   :  { %1562 = vst.msk [vmem:[%s2350_s4 + $0x8] sm:$0xff] %vm1560_vm1, %v1722_v41  ;;  %v1538_v19 = vadd.f32 %v1720_v50, %v1506_v18 }
 0x2b3   :  { %v1723_v20 = vclamps-f32 %v1538_v19, 50.0 }
 0x2b4   :  { %v1511_v21 = vpop.xlane.xlu1 %1510 }
 0x2b5   :  { %1563 = vst.msk [vmem:[%s2350_s4 + $0x10] sm:$0xff] %vm1560_vm1, %v1723_v20  ;;  %v1539_v22 = vadd.f32 %v1720_v50, %v1511_v21 }
 0x2b7   :  { %v1724_v23 = vclamps-f32 %v1539_v22, 50.0 }
 0x2b9   :  { %v1516_v24 = vpop.xlane.xlu0 %1515  ;;  %1564 = vst.msk [vmem:[%s2350_s4 + $0x18] sm:$0xff] %vm1560_vm1, %v1724_v23 }
 0x2ba   :  { %v1540_v26 = vadd.f32 %v1720_v50, %v1516_v24 }
 0x2bc   :  { %v1521_v31 = vpop.xlane.xlu1 %1520  ;;  %v1725_v33 = vclamps-f32 %v1540_v26, 50.0 }
 0x2bd   :  { %v1541_v34 = vadd.f32 %v1720_v50, %v1521_v31 }
 0x2be   :  { %1565 = vst.msk [vmem:[%s2350_s4 + $0x20] sm:$0xff] %vm1560_vm1, %v1725_v33 }
 0x2bf   :  { %v1726_v35 = vclamps-f32 %v1541_v34, 50.0 }
 0x2c0   :  { %v1526_v36 = vpop.xlane.xlu0 %1525 }
 0x2c1   :  { %v1542_v37 = vadd.f32 %v1720_v50, %v1526_v36  ;;  %1566 = vst.msk [vmem:[%s2350_s4 + $0x28] sm:$0xff] %vm1560_vm1, %v1726_v35 }
 0x2c2   :  { %v1531_v38 = vpop.xlane.xlu1 %1530 }
 0x2c3   :  { %v1727_v15 = vclamps-f32 %v1542_v37, 50.0  ;;  %v1543_v40 = vadd.f32 %v1720_v50, %v1531_v38 }
 0x2c5   :  { %1567 = vst.msk [vmem:[%s2350_s4 + $0x30] sm:$0xff] %vm1560_vm1, %v1727_v15  ;;  %v1728_v42 = vclamps-f32 %v1543_v40, 50.0 }
 0x2c7   :  { %1568 = vst.msk [vmem:[%s2350_s4 + $0x38] sm:$0xff] %vm1560_vm1, %v1728_v42 }
 0x2c8   :  { %1573 = vsyncpa [#allocation3], 1 }

</bundles_post_ra>
